<compile_context>
chip_gen: v7x
topology: tpu7x:2x2x1
jax: 0.10.0
libtpu: 0.0.40
codegen_flags: <defaults>
</compile_context>

<pallas_src>
import jax
import jax.numpy as jnp
from jax.experimental import pallas as pl
from jax.experimental.pallas import tpu as pltpu


_MAX_TB = 8192  # max batch-tile (lanes); ~3 MiB VMEM with double buffering


def _round_up(n, m):
    return (n + m - 1) // m * m


def _policy_value_kernel(w_ref, b_ref, x_ref, out_ref):
    """w_ref: [19,16] packed weights (rows 0:16 layer-1 [cols 0:4 used],
                                      rows 16:19 block-diagonal layer-2).
       b_ref: [19,1]  packed biases   (rows 0:16 layer-1, rows 16:19 layer-2).
       x_ref: [4,TB]  input, batch on lanes.
       out_ref: [3,TB] rows 0:2 = policy, row 2 = value."""
    w1 = w_ref[0:16, 0:4]          # [16, 4]  fused first-layer weight
    w2 = w_ref[16:19, :]           # [3, 16]  block-diagonal second-layer weight
    b1 = b_ref[0:16, :]            # [16, 1]
    b2 = b_ref[16:19, :]           # [3, 1]

    x = x_ref[...]                 # [4, TB] f32

    # Kernel is HBM-bound; these tiny matmuls are not the bottleneck.
    h = jnp.tanh(jnp.dot(w1, x, preferred_element_type=jnp.float32) + b1)   # [16, TB]
    out_ref[...] = jnp.dot(w2, h, preferred_element_type=jnp.float32) + b2  # [3, TB]


def policy_value_net(x, packed_params):
    """x: [B, 4]. Returns (policy [B, 2], value [B, 1]) in float32."""
    w_slab, b_slab = packed_params
    B = x.shape[0]

    TB = min(_MAX_TB, _round_up(max(B, 1), 128))   # lane tile, multiple of 128
    Bp = _round_up(B, TB)

    # batch-on-lanes, zero-padded to a whole number of tiles
    xT = jnp.pad(x.astype(jnp.float32).T, ((0, 0), (0, Bp - B)))   # [4, Bp]

    out = pl.pallas_call(
        _policy_value_kernel,
        out_shape=jax.ShapeDtypeStruct((3, Bp), jnp.float32),
        grid=(Bp // TB,),
        in_specs=[
            pl.BlockSpec((19, 16), lambda i: (0, 0)),   # packed weights (resident)
            pl.BlockSpec((19, 1), lambda i: (0, 0)),    # packed biases  (resident)
            pl.BlockSpec((4, TB), lambda i: (0, i)),    # input batch tile
        ],
        out_specs=pl.BlockSpec((3, TB), lambda i: (0, i)),
        compiler_params=pltpu.CompilerParams(
            dimension_semantics=("parallel",),          # lets v7x shard across its 2 TCs
        ),
    )(w_slab, b_slab, xT)

    policy = out[0:2, :B].T        # [B, 2]
    value = out[2:3, :B].T         # [B, 1]
    return policy, value


# ----------------------------- parameters ---------------------------------

def init_params(key):
    """Per-layer params in PyTorch nn.Linear convention: weight [out, in], bias [out],
    with the default uniform(+-1/sqrt(fan_in)) init."""
    def linear(k, fan_in, fan_out):
        kw, kb = jax.random.split(k)
        bound = 1.0 / jnp.sqrt(fan_in)
        w = jax.random.uniform(kw, (fan_out, fan_in), jnp.float32, -bound, bound)
        b = jax.random.uniform(kb, (fan_out,), jnp.float32, -bound, bound)
        return w, b

    k1, k2, k3, k4 = jax.random.split(key, 4)
    return (linear(k1, 4, 8),   # policy layer 1
            linear(k2, 8, 2),   # policy layer 2
            linear(k3, 4, 8),   # value  layer 1
            linear(k4, 8, 1))   # value  layer 2


def pack_params(raw):
    """Pack the 8 tiny tensors into two slabs consumed by the kernel (done once,
    outside the kernel)."""
    (wp1, bp1), (wp2, bp2), (wv1, bv1), (wv2, bv2) = raw

    w_slab = jnp.zeros((19, 16), jnp.float32)
    w_slab = w_slab.at[0:8, 0:4].set(wp1)       # policy L1 [8,4]
    w_slab = w_slab.at[8:16, 0:4].set(wv1)      # value  L1 [8,4]
    w_slab = w_slab.at[16:18, 0:8].set(wp2)     # policy L2 [2,8]  (block-diag)
    w_slab = w_slab.at[18:19, 8:16].set(wv2)    # value  L2 [1,8]  (block-diag)

    b_slab = jnp.zeros((19, 1), jnp.float32)
    b_slab = b_slab.at[0:8, 0].set(bp1)
    b_slab = b_slab.at[8:16, 0].set(bv1)
    b_slab = b_slab.at[16:18, 0].set(bp2)
    b_slab = b_slab.at[18:19, 0].set(bv2)
    return w_slab, b_slab


def reference(x, raw):
    (wp1, bp1), (wp2, bp2), (wv1, bv1), (wv2, bv2) = raw
    policy = jnp.tanh(x @ wp1.T + bp1) @ wp2.T + bp2
    value = jnp.tanh(x @ wv1.T + bv1) @ wv2.T + bv2
    return policy, value


if __name__ == "__main__":
    key = jax.random.PRNGKey(0)
    k_params, k_x = jax.random.split(key)

    raw_params = init_params(k_params)
    packed = pack_params(raw_params)

    B = 8
    x = jax.random.normal(k_x, (B, 4), jnp.float32)

    policy, value = policy_value_net(x, packed)
    jax.block_until_ready((policy, value))

    p_ref, v_ref = reference(x, raw_params)
    assert policy.shape == (B, 2) and value.shape == (B, 1)
    assert jnp.allclose(policy, p_ref, atol=1e-5, rtol=1e-5)
    assert jnp.allclose(value, v_ref, atol=1e-5, rtol=1e-5)

    print("KERNEL_OK")
</pallas_src>

<mosaic_0001>
module attributes {stable_mosaic.version = 11 : i64} {
  func.func @_policy_value_kernel(%arg0: i32, %arg1: memref<19x16xf32, #tpu.memory_space<vmem>>, %arg2: memref<19x1xf32, #tpu.memory_space<vmem>>, %arg3: memref<4x128xf32, #tpu.memory_space<vmem>>, %arg4: memref<3x128xf32, #tpu.memory_space<vmem>>) attributes {dimension_semantics = [#tpu.dimension_semantics<parallel>], iteration_bounds = array<i64: 1>, scalar_prefetch = 0 : i64, scratch_operands = 0 : i64, tpu.core_type = #tpu.core_type<tc>, window_params = [{pipeline_mode = #tpu.pipeline_mode<synchronous>, transform_indices = @transform_0, window_bounds = array<i64: 19, 16>}, {pipeline_mode = #tpu.pipeline_mode<synchronous>, transform_indices = @transform_1, window_bounds = array<i64: 19, 1>}, {transform_indices = @transform_2, window_bounds = array<i64: 4, 128>}, {transform_indices = @transform_3, window_bounds = array<i64: 3, 128>}]} {
    %c0 = arith.constant 0 : index
    %c0_0 = arith.constant 0 : index
    %0 = vector.load %arg1[%c0, %c0_0] : memref<19x16xf32, #tpu.memory_space<vmem>>, vector<16x4xf32>
    %c16 = arith.constant 16 : index
    %c0_1 = arith.constant 0 : index
    %1 = vector.load %arg1[%c16, %c0_1] : memref<19x16xf32, #tpu.memory_space<vmem>>, vector<3x16xf32>
    %c0_2 = arith.constant 0 : index
    %c0_3 = arith.constant 0 : index
    %2 = vector.load %arg2[%c0_2, %c0_3] : memref<19x1xf32, #tpu.memory_space<vmem>>, vector<16x1xf32>
    %c16_4 = arith.constant 16 : index
    %c0_5 = arith.constant 0 : index
    %3 = vector.load %arg2[%c16_4, %c0_5] : memref<19x1xf32, #tpu.memory_space<vmem>>, vector<3x1xf32>
    %c0_6 = arith.constant 0 : index
    %c0_7 = arith.constant 0 : index
    %4 = vector.load %arg3[%c0_6, %c0_7] : memref<4x128xf32, #tpu.memory_space<vmem>>, vector<4x128xf32>
    %cst = arith.constant dense<0.000000e+00> : vector<16x128xf32>
    %5 = tpu.matmul %0, %4, %cst {dimension_numbers = #tpu.dot_dimension_numbers<[1], [0], [0], [1], [0, 0, 1, 1], [], []>} : vector<16x4xf32>, vector<4x128xf32>, vector<16x128xf32> -> vector<16x128xf32>
    %6 = vector.broadcast %2 : vector<16x1xf32> to vector<16x128xf32>
    %7 = arith.addf %5, %6 : vector<16x128xf32>
    %8 = math.tanh %7 : vector<16x128xf32>
    %cst_8 = arith.constant dense<0.000000e+00> : vector<3x128xf32>
    %9 = tpu.matmul %1, %8, %cst_8 {dimension_numbers = #tpu.dot_dimension_numbers<[1], [0], [0], [1], [0, 0, 1, 1], [], []>} : vector<3x16xf32>, vector<16x128xf32>, vector<3x128xf32> -> vector<3x128xf32>
    %10 = vector.broadcast %3 : vector<3x1xf32> to vector<3x128xf32>
    %11 = arith.addf %9, %10 : vector<3x128xf32>
    %c0_9 = arith.constant 0 : index
    %c0_10 = arith.constant 0 : index
    %12 = vector.load %arg4[%c0_9, %c0_10] : memref<3x128xf32, #tpu.memory_space<vmem>>, vector<3x128xf32>
    tpu.vector_store %arg4[%c0_9, %c0_10], %11 {strides = array<i32>} : memref<3x128xf32, #tpu.memory_space<vmem>>, vector<3x128xf32>,
    return
  }
  func.func @transform_0(%arg0: i32) -> (i32, i32) {
    %c0_i32 = arith.constant 0 : i32
    %c0_i32_0 = arith.constant 0 : i32
    %c0_i32_1 = arith.constant 0 : i32
    return %c0_i32, %c0_i32_0 : i32, i32
  }
  func.func @transform_1(%arg0: i32) -> (i32, i32) {
    %c0_i32 = arith.constant 0 : i32
    %c0_i32_0 = arith.constant 0 : i32
    %c0_i32_1 = arith.constant 0 : i32
    return %c0_i32, %c0_i32_0 : i32, i32
  }
  func.func @transform_2(%arg0: i32) -> (i32, i32) {
    %c0_i32 = arith.constant 0 : i32
    %c0_i32_0 = arith.constant 0 : i32
    return %c0_i32, %arg0 : i32, i32
  }
  func.func @transform_3(%arg0: i32) -> (i32, i32) {
    %c0_i32 = arith.constant 0 : i32
    %c0_i32_0 = arith.constant 0 : i32
    return %c0_i32, %arg0 : i32, i32
  }
}

</mosaic_0001>

<bundles_post_ra>
// kernel: tpu_custom_call.1
= control target key start
LH: loop header
LB: loop body
LE: loop exit
PB: predicated region body
PF: predicated region fallthrough
CT: control target
= control target key end

     0   :  { %vm39_vm0 = vcmask 1043456   ;;  %vm32_vm1 = vcmask 31744   ;;  %s332_s0 = inlined_call_operand.vmem [shape: f32[19,16], index: 0, kind: input, shape index: {}]   ;;  %s333_s1 = inlined_call_operand.vmem [shape: f32[19,1], index: 1, kind: input, shape index: {}]   ;;  %s334_s2 = inlined_call_operand.vmem [shape: f32[4,128], index: 2, kind: input, shape index: {}]   ;;  %s335_s3 = inlined_call_operand.hbm [shape: f32[3,128], index: 3, kind: output, shape index: {}]  }
   0x1   :  { %v21_v0 = vld [vmem:[%s334_s2] sm:$0xf]  ;;  %v16_v2 = vld [vmem:[%s332_s0 + $0x8] sm:$0xff] }
   0x2   :  { %v15_v1 = vld [vmem:[%s332_s0] sm:$0xff]  ;;  %224 = vmatprep.subr.msk.mxu0 %vm39_vm0, %v21_v0 }
   0x3   :  { %226 = vmatprep.mubr.msk.f32.mxu0 %vm32_vm1, %v15_v1  ;;  %v18_v3 = vld [vmem:[%s333_s1] sm:$0xff] }
   0x4   :  { %8 = vsyncpa [#allocation3], 0  ;;  %225 = vmatpush3.msk.msra.mxu0 %vm39_vm0, %v21_v0  ;;  %v274_v4 = vmov 0   ;;  %v19_v5 = vld [vmem:[%s333_s1 + $0x8] sm:$0xff]  ;;  %v275_v6 = vmov 0.0|0.0   ;;  %vm276_vm2 = vmmov 0  }
   0x5   :  { %244 = vset.pattern.permute.xlu0 %v274_v4  ;;  %227 = vmatmul.mubr.msk.f32.vlgmr.msra.gmra.mrb[0].mxu0 %vm32_vm1, %v16_v2  ;;  %v277_v7 = vmov 0.0   ;;  %v20_v8 = vld [vmem:[%s333_s1 + $0x10] sm:$0x7]  ;;  %vm125_vm3 = vcmask 130048   ;;  %s278_s1 = smov [#allocation2]  }
   0x6   :  { %24 = vperm.xlu0 %244, %v18_v3   ;;  %245 = vset.pattern.permute.xlu1 %v274_v4  ;;  %v17_v18 = vld [vmem:[%s332_s0 + $0x10] sm:$0x7]  ;;  %s206_s25 = sshll.u32 %s278_s1, 4  ;;  %s207_s25 = int_to_ptr.vmem [resolvable:$true] %s206_s25 }
   0x7   :  { %236 = vmatprep.subr.bf16.mxu1 %v275_v6  ;;  %233 = vmatprep.mubr.msk.f32.mxu1 %vm276_vm2, %v277_v7  ;;  %s250_s26 = scalar_lea.vmem %s207_s25, 64  ;;  %p255_p1 = scmp.lt.s32.totalorder %s207_s25, %s207_s25 }
   0x8   :  { %122 = vperm.xlu1 %245, %v20_v8   ;;  %p251_p0 = scmp.ne.s32.totalorder %s207_s25, %s250_s26  ;;  %p256_p2 = scmp.lt.s32.totalorder %s250_s26, %s250_s26 }
   0xa   :  { %29 = vperm.xlu0 %244, %v19_v5   ;;  %p257_p3 = por %p256_p2, %p255_p1 }
   0xc   :  { %p258_p4 = pnand %p257_p3, %p251_p0 }
  0x85   :  { %v25_v9 = vpop.permute.xlu0 %24 }
  0x87   :  { %v123_v19 = vpop.permute.xlu1 %122 }
  0x89   :  { %v30_v10 = vpop.permute.xlu0 %29 }
  0xd8   :  { %v228_v11 = vpop.f32.mrb[0].mxu0 }
  0xd9   :  { %v115_v12 = vadd.f32 %v228_v11, %v30_v10  ;;  %v109_v13 = vpop.f32.mrb[1].mxu0 }
  0xda   :  { %v110_v14 = vadd.f32 %v109_v13, %v25_v9 }
  0xdb   :  { %246 = vtanh.f32 %v115_v12 }
  0xdc   :  { %248 = vtanh.f32 %v110_v14 }
  0xe5   :  { %v247_v15 = vpop.eup %246 }
  0xe6   :  { %v249_v16 = vpop.eup %248 }
  0xe7   :  { %v237_v17 = vpack.c.bf16 %v247_v15, %v249_v16 }
  0xe9   :  { %238 = vmatpush3.bf16.msra.mxu1 %v237_v17 }
  0xec   :  { %234 = vmatmul.mubr.msk.f32.vlgmr.msra.gmra.mrb[0].mxu1 %vm125_vm3, %v17_v18 }
 0x1bf   :  { %v195_v20 = vpop.f32.mrb[0].mxu1 }
 0x1c0   :  { %v196_v21 = vadd.f32 %v195_v20, %v123_v19  ;;  %v235_v22 = vpop.f32.mrb[1].mxu1 }
 0x1c2   :  { %199 = vst [vmem:[#allocation2] sm:$0x7] %v196_v21 }
 0x1c3   :  { %261 = shalt.err (!%p258_p4)
}
 0x1c4   :  { %s262_s0 = scalar_lea.hbm %s335_s3, 64 }
 0x1c5   :  { %p263_p5 = scmp.ne.s32.totalorder %s335_s3, %s262_s0  ;;  %p266_p6 = scmp.lt.u32.totalorder %s262_s0, %s335_s3 }
 0x1c7   :  { %p268_p7 = pnand %p266_p6, %p263_p5 }
 0x1c9   :  { %271 = shalt.err (!%p268_p7)
}
 0x1ca   :  { %209 = dma.vmem_to_hbm [thread:$0]  %s207_s25, 64, %s335_s3, [#allocation3]  }
 0x1cb   :  { %272 = dma.done.wait [#allocation3], 64  }
 0x1cc   :  { %273 = vsyncadd [#allocation3], 4294967232 }
 0x1cd   :  { %213 = vsyncpa [#allocation3], 1 }

</bundles_post_ra>
